<compile_context>
chip_gen: v7x
topology: tpu7x:2x2x1
jax: 0.10.0
libtpu: 0.0.40
codegen_flags: <defaults>
</compile_context>

<pallas_src>
import jax
import jax.numpy as jnp
from jax.experimental import pallas as pl
from jax.experimental.pallas import tpu as pltpu

_LANE = 128
_SUBLANE = 8
_PAD_GRANULE = _SUBLANE * _LANE  # 1024 points: keeps the block axis 8-aligned

# symmetric-channel order produced by the kernel: (c00, c01, c02, c11, c12, c22)
_SYM_TO_FULL = jnp.array([0, 1, 2, 1, 3, 4, 2, 4, 5], jnp.int32)


def _covariance_kernel(quats_ref, scales_ref, cov_ref):
    # quats_ref : (4, TB, 128)  channels = (w, x, y, z)   any float dtype
    # scales_ref: (3, TB, 128)  channels = (sx, sy, sz)
    # cov_ref   : (6, TB, 128) f32, packed symmetric (c00,c01,c02,c11,c12,c22)
    f32 = jnp.float32
    w = quats_ref[0].astype(f32)
    x = quats_ref[1].astype(f32)
    y = quats_ref[2].astype(f32)
    z = quats_ref[3].astype(f32)

    inv_norm = jax.lax.rsqrt(w * w + x * x + y * y + z * z)  # EUP, free slot
    w = w * inv_norm
    x = x * inv_norm
    y = y * inv_norm
    z = z * inv_norm

    # hoisted unique quaternion products
    xx = x * x
    yy = y * y
    zz = z * z
    xy = x * y
    xz = x * z
    yz = y * z
    wx = w * x
    wy = w * y
    wz = w * z

    r00 = 1.0 - 2.0 * (yy + zz)
    r01 = 2.0 * (xy - wz)
    r02 = 2.0 * (xz + wy)
    r10 = 2.0 * (xy + wz)
    r11 = 1.0 - 2.0 * (xx + zz)
    r12 = 2.0 * (yz - wx)
    r20 = 2.0 * (xz - wy)
    r21 = 2.0 * (yz + wx)
    r22 = 1.0 - 2.0 * (xx + yy)

    s0 = scales_ref[0].astype(f32)
    s1 = scales_ref[1].astype(f32)
    s2 = scales_ref[2].astype(f32)
    s0 = s0 * s0
    s1 = s1 * s1
    s2 = s2 * s2

    # cov[i, j] = sum_k R[i, k] * s_k^2 * R[j, k]  -> 6 unique entries only
    cov_ref[0] = r00 * r00 * s0 + r01 * r01 * s1 + r02 * r02 * s2  # c00
    cov_ref[1] = r00 * r10 * s0 + r01 * r11 * s1 + r02 * r12 * s2  # c01
    cov_ref[2] = r00 * r20 * s0 + r01 * r21 * s1 + r02 * r22 * s2  # c02
    cov_ref[3] = r10 * r10 * s0 + r11 * r11 * s1 + r12 * r12 * s2  # c11
    cov_ref[4] = r10 * r20 * s0 + r11 * r21 * s1 + r12 * r22 * s2  # c12
    cov_ref[5] = r20 * r20 * s0 + r21 * r21 * s1 + r22 * r22 * s2  # c22


def _choose_tiling(blocks, max_tile_points):
    """Pick (tile_blocks, grid) for the lane-block axis."""
    max_tile_blocks = max(_SUBLANE, (max_tile_points // _LANE) // _SUBLANE * _SUBLANE)
    if blocks <= _SUBLANE:
        # single block; block dim == full array dim satisfies the (8,128) rule
        return blocks, 1
    # Prefer >= 2 grid steps when the problem exceeds one sublane group so the
    # v7x megacore ("parallel" axis) can shard the grid across both TCs.
    half = pl.cdiv(pl.cdiv(blocks, 2), _SUBLANE) * _SUBLANE
    tile_blocks = min(max_tile_blocks, half)
    grid = pl.cdiv(blocks, tile_blocks)
    # Nudge odd multi-step grids toward an even step count (cheap, helps v7x).
    if grid > 2 and grid % 2 == 1:
        even_tile = pl.cdiv(pl.cdiv(blocks, grid + 1), _SUBLANE) * _SUBLANE
        if even_tile >= _SUBLANE:
            tile_blocks = even_tile
            grid = pl.cdiv(blocks, tile_blocks)
    return tile_blocks, grid


def compute_covariance_pallas(quats_cf, scales_cf, *, num_valid=None,
                              max_tile_points=131072, return_packed=False):
    """quats_cf: (4, Ns) float, scales_cf: (3, Ns) float (channels-first).

    `num_valid` (<= Ns) selects how many leading points are real; extra stored
    points are padding.  Returns (N, 3, 3) f32 by default, or the packed
    symmetric channels-first (6, N) form when `return_packed=True`.
    """
    n_stored = quats_cf.shape[1]
    n = n_stored if num_valid is None else num_valid

    # Minimal padding only if the caller hands an un-aligned array; the model
    # stores its parameters pre-padded so this branch is normally dead.
    n_pad = pl.cdiv(n_stored, _LANE) * _LANE
    if n_pad != n_stored:
        pad = n_pad - n_stored
        pad_q = jnp.zeros((4, pad), quats_cf.dtype)
        pad_q = pad_q.at[0].set(jnp.asarray(1.0, quats_cf.dtype))  # identity quats: rsqrt stays finite
        quats_cf = jnp.concatenate([quats_cf, pad_q], axis=1)
        scales_cf = jnp.concatenate(
            [scales_cf, jnp.zeros((3, pad), scales_cf.dtype)], axis=1)

    blocks = n_pad // _LANE
    tile_blocks, grid = _choose_tiling(blocks, max_tile_points)

    # free row-major reshapes: (C, N) -> (C, N//128, 128)
    quats_3d = quats_cf.reshape(4, blocks, _LANE)
    scales_3d = scales_cf.reshape(3, blocks, _LANE)

    cov_6 = pl.pallas_call(
        _covariance_kernel,
        out_shape=jax.ShapeDtypeStruct((6, blocks, _LANE), jnp.float32),
        grid_spec=pltpu.PrefetchScalarGridSpec(
            num_scalar_prefetch=0,
            grid=(grid,),
            in_specs=[
                pl.BlockSpec((4, tile_blocks, _LANE), lambda i: (0, i, 0)),
                pl.BlockSpec((3, tile_blocks, _LANE), lambda i: (0, i, 0)),
            ],
            out_specs=pl.BlockSpec((6, tile_blocks, _LANE), lambda i: (0, i, 0)),
        ),
        compiler_params=pltpu.CompilerParams(
            dimension_semantics=("parallel",),
            vmem_limit_bytes=32 * 1024 * 1024,  # raise v5e's 16 MiB scoped default
        ),
        cost_estimate=pl.CostEstimate(
            flops=80 * n_pad,
            transcendentals=n_pad,
            bytes_accessed=(4 + 3 + 6) * 4 * n_pad,
        ),
    )(quats_3d, scales_3d)

    cov_6n = cov_6.reshape(6, n_pad)[:, :n]        # (6, N) channels-first
    if return_packed:
        return cov_6n
    # TODO(synk): if a downstream consumer accepts the packed symmetric (6, N)
    # channels-first form, return `cov_6n` directly (return_packed=True) and
    # skip this re-layout — the kernel is HBM-bound and this transpose roughly
    # doubles the end-to-end bytes just to honour the (N, 3, 3) convention.
    return cov_6n[_SYM_TO_FULL].T.reshape(n, 3, 3)


class GaussianSplattingJAX:
    """Deterministic re-implementation of the PyTorch module's parameters."""

    def __init__(self, num_points, key):
        self.num_points = num_points
        k_means, k_quats = jax.random.split(key, 2)
        self.means = jax.random.normal(k_means, (num_points, 3), jnp.float32)
        self.colors = jnp.ones((num_points, 3), jnp.float32) * 0.5
        self.opacities = jnp.ones((num_points,), jnp.float32) * 0.5

        # channels-first + pre-padded to 1024-point granularity: the kernel
        # never has to transpose or concatenate the parameters per call.
        n_stored = pl.cdiv(num_points, _PAD_GRANULE) * _PAD_GRANULE
        quats = jax.random.normal(k_quats, (4, num_points), jnp.float32)
        scales = jnp.ones((3, num_points), jnp.float32) * 0.01
        if n_stored != num_points:
            pad = n_stored - num_points
            pad_q = jnp.zeros((4, pad), jnp.float32).at[0].set(1.0)  # identity quats
            quats = jnp.concatenate([quats, pad_q], axis=1)          # one-time, at init
            scales = jnp.concatenate([scales, jnp.zeros((3, pad), jnp.float32)], axis=1)
        self.quats_cf = quats     # (4, n_stored)
        self.scales_cf = scales   # (3, n_stored)

    @property
    def quats(self):
        return self.quats_cf[:, :self.num_points].T   # (N, 4) view for checks

    @property
    def scales(self):
        return self.scales_cf[:, :self.num_points].T  # (N, 3) view for checks

    def forward(self, points, colors, scales):
        # points/colors/scales arguments are unused by the reference forward.
        cov = compute_covariance_pallas(
            self.quats_cf, self.scales_cf, num_valid=self.num_points)
        return (self.means, self.colors, cov, self.opacities)


def _reference_covariance(quats, scales):
    """Pure-JAX reference (mirrors the PyTorch compute_covariance)."""
    q = quats / jnp.linalg.norm(quats, axis=-1, keepdims=True)
    w, x, y, z = q[:, 0], q[:, 1], q[:, 2], q[:, 3]
    rot = jnp.stack([
        jnp.stack([1 - 2 * y**2 - 2 * z**2, 2 * x * y - 2 * w * z, 2 * x * z + 2 * w * y], -1),
        jnp.stack([2 * x * y + 2 * w * z, 1 - 2 * x**2 - 2 * z**2, 2 * y * z - 2 * w * x], -1),
        jnp.stack([2 * x * z - 2 * w * y, 2 * y * z + 2 * w * x, 1 - 2 * x**2 - 2 * y**2], -1),
    ], axis=-2)
    scale = jax.vmap(jnp.diag)(scales)
    cov = rot @ scale @ jnp.swapaxes(scale, -1, -2) @ jnp.swapaxes(rot, -1, -2)
    return cov


if __name__ == "__main__":
    key = jax.random.PRNGKey(0)
    num_points = 1000   # non-multiple of 128: exercises the init-time padding

    k_model, k_pts, k_col, k_scl = jax.random.split(key, 4)
    model = GaussianSplattingJAX(num_points, k_model)

    # example forward inputs (unused by the reference forward, kept for parity)
    points = jax.random.normal(k_pts, (num_points, 3), jnp.float32)
    colors = jax.random.uniform(k_col, (num_points, 3), jnp.float32)
    scales = jax.random.uniform(k_scl, (num_points, 3), jnp.float32)

    means_out, colors_out, cov_out, opac_out = model.forward(points, colors, scales)
    jax.block_until_ready((means_out, colors_out, cov_out, opac_out))

    # sanity check against pure-JAX reference
    cov_ref = _reference_covariance(model.quats, model.scales)
    assert cov_out.shape == (num_points, 3, 3)
    assert means_out.shape == (num_points, 3)
    assert colors_out.shape == (num_points, 3)
    assert opac_out.shape == (num_points,)
    assert jnp.allclose(cov_out, cov_ref, atol=1e-5, rtol=1e-5)

    # packed symmetric path (what a fused consumer would take) also checks out
    cov6 = compute_covariance_pallas(model.quats_cf, model.scales_cf,
                                     num_valid=num_points, return_packed=True)
    assert cov6.shape == (6, num_points)
    assert jnp.allclose(cov6[1], cov_ref[:, 0, 1], atol=1e-5, rtol=1e-5)

    print("KERNEL_OK")
</pallas_src>

<mosaic_0001>
module attributes {stable_mosaic.version = 11 : i64} {
  func.func @_covariance_kernel(%arg0: i32, %arg1: memref<4x8x128xf32, #tpu.memory_space<vmem>>, %arg2: memref<3x8x128xf32, #tpu.memory_space<vmem>>, %arg3: memref<6x8x128xf32, #tpu.memory_space<vmem>>) attributes {dimension_semantics = [#tpu.dimension_semantics<parallel>], iteration_bounds = array<i64: 1>, scalar_prefetch = 0 : i64, scratch_operands = 0 : i64, tpu.core_type = #tpu.core_type<tc>, window_params = [{transform_indices = @transform_0, window_bounds = array<i64: 4, 8, 128>}, {transform_indices = @transform_1, window_bounds = array<i64: 3, 8, 128>}, {transform_indices = @transform_2, window_bounds = array<i64: 6, 8, 128>}]} {
    %c0 = arith.constant 0 : index
    %c0_0 = arith.constant 0 : index
    %c0_1 = arith.constant 0 : index
    %0 = vector.load %arg1[%c0, %c0_0, %c0_1] : memref<4x8x128xf32, #tpu.memory_space<vmem>>, vector<1x8x128xf32>
    %1 = vector.shape_cast %0 : vector<1x8x128xf32> to vector<8x128xf32>
    %c1 = arith.constant 1 : index
    %c0_2 = arith.constant 0 : index
    %c0_3 = arith.constant 0 : index
    %2 = vector.load %arg1[%c1, %c0_2, %c0_3] : memref<4x8x128xf32, #tpu.memory_space<vmem>>, vector<1x8x128xf32>
    %3 = vector.shape_cast %2 : vector<1x8x128xf32> to vector<8x128xf32>
    %c2 = arith.constant 2 : index
    %c0_4 = arith.constant 0 : index
    %c0_5 = arith.constant 0 : index
    %4 = vector.load %arg1[%c2, %c0_4, %c0_5] : memref<4x8x128xf32, #tpu.memory_space<vmem>>, vector<1x8x128xf32>
    %5 = vector.shape_cast %4 : vector<1x8x128xf32> to vector<8x128xf32>
    %c3 = arith.constant 3 : index
    %c0_6 = arith.constant 0 : index
    %c0_7 = arith.constant 0 : index
    %6 = vector.load %arg1[%c3, %c0_6, %c0_7] : memref<4x8x128xf32, #tpu.memory_space<vmem>>, vector<1x8x128xf32>
    %7 = vector.shape_cast %6 : vector<1x8x128xf32> to vector<8x128xf32>
    %8 = arith.mulf %1, %1 : vector<8x128xf32>
    %9 = arith.mulf %3, %3 : vector<8x128xf32>
    %10 = arith.addf %8, %9 : vector<8x128xf32>
    %11 = arith.mulf %5, %5 : vector<8x128xf32>
    %12 = arith.addf %10, %11 : vector<8x128xf32>
    %13 = arith.mulf %7, %7 : vector<8x128xf32>
    %14 = arith.addf %12, %13 : vector<8x128xf32>
    %15 = math.rsqrt %14 : vector<8x128xf32>
    %16 = arith.mulf %1, %15 : vector<8x128xf32>
    %17 = arith.mulf %3, %15 : vector<8x128xf32>
    %18 = arith.mulf %5, %15 : vector<8x128xf32>
    %19 = arith.mulf %7, %15 : vector<8x128xf32>
    %20 = arith.mulf %17, %17 : vector<8x128xf32>
    %21 = arith.mulf %18, %18 : vector<8x128xf32>
    %22 = arith.mulf %19, %19 : vector<8x128xf32>
    %23 = arith.mulf %17, %18 : vector<8x128xf32>
    %24 = arith.mulf %17, %19 : vector<8x128xf32>
    %25 = arith.mulf %18, %19 : vector<8x128xf32>
    %26 = arith.mulf %16, %17 : vector<8x128xf32>
    %27 = arith.mulf %16, %18 : vector<8x128xf32>
    %28 = arith.mulf %16, %19 : vector<8x128xf32>
    %29 = arith.addf %21, %22 : vector<8x128xf32>
    %cst = arith.constant 2.000000e+00 : f32
    %30 = vector.broadcast %cst : f32 to vector<8x128xf32>
    %31 = arith.mulf %30, %29 : vector<8x128xf32>
    %cst_8 = arith.constant 1.000000e+00 : f32
    %32 = vector.broadcast %cst_8 : f32 to vector<8x128xf32>
    %33 = arith.subf %32, %31 : vector<8x128xf32>
    %34 = arith.subf %23, %28 : vector<8x128xf32>
    %cst_9 = arith.constant 2.000000e+00 : f32
    %35 = vector.broadcast %cst_9 : f32 to vector<8x128xf32>
    %36 = arith.mulf %35, %34 : vector<8x128xf32>
    %37 = arith.addf %24, %27 : vector<8x128xf32>
    %cst_10 = arith.constant 2.000000e+00 : f32
    %38 = vector.broadcast %cst_10 : f32 to vector<8x128xf32>
    %39 = arith.mulf %38, %37 : vector<8x128xf32>
    %40 = arith.addf %23, %28 : vector<8x128xf32>
    %cst_11 = arith.constant 2.000000e+00 : f32
    %41 = vector.broadcast %cst_11 : f32 to vector<8x128xf32>
    %42 = arith.mulf %41, %40 : vector<8x128xf32>
    %43 = arith.addf %20, %22 : vector<8x128xf32>
    %cst_12 = arith.constant 2.000000e+00 : f32
    %44 = vector.broadcast %cst_12 : f32 to vector<8x128xf32>
    %45 = arith.mulf %44, %43 : vector<8x128xf32>
    %cst_13 = arith.constant 1.000000e+00 : f32
    %46 = vector.broadcast %cst_13 : f32 to vector<8x128xf32>
    %47 = arith.subf %46, %45 : vector<8x128xf32>
    %48 = arith.subf %25, %26 : vector<8x128xf32>
    %cst_14 = arith.constant 2.000000e+00 : f32
    %49 = vector.broadcast %cst_14 : f32 to vector<8x128xf32>
    %50 = arith.mulf %49, %48 : vector<8x128xf32>
    %51 = arith.subf %24, %27 : vector<8x128xf32>
    %cst_15 = arith.constant 2.000000e+00 : f32
    %52 = vector.broadcast %cst_15 : f32 to vector<8x128xf32>
    %53 = arith.mulf %52, %51 : vector<8x128xf32>
    %54 = arith.addf %25, %26 : vector<8x128xf32>
    %cst_16 = arith.constant 2.000000e+00 : f32
    %55 = vector.broadcast %cst_16 : f32 to vector<8x128xf32>
    %56 = arith.mulf %55, %54 : vector<8x128xf32>
    %57 = arith.addf %20, %21 : vector<8x128xf32>
    %cst_17 = arith.constant 2.000000e+00 : f32
    %58 = vector.broadcast %cst_17 : f32 to vector<8x128xf32>
    %59 = arith.mulf %58, %57 : vector<8x128xf32>
    %cst_18 = arith.constant 1.000000e+00 : f32
    %60 = vector.broadcast %cst_18 : f32 to vector<8x128xf32>
    %61 = arith.subf %60, %59 : vector<8x128xf32>
    %c0_19 = arith.constant 0 : index
    %c0_20 = arith.constant 0 : index
    %c0_21 = arith.constant 0 : index
    %62 = vector.load %arg2[%c0_19, %c0_20, %c0_21] : memref<3x8x128xf32, #tpu.memory_space<vmem>>, vector<1x8x128xf32>
    %63 = vector.shape_cast %62 : vector<1x8x128xf32> to vector<8x128xf32>
    %c1_22 = arith.constant 1 : index
    %c0_23 = arith.constant 0 : index
    %c0_24 = arith.constant 0 : index
    %64 = vector.load %arg2[%c1_22, %c0_23, %c0_24] : memref<3x8x128xf32, #tpu.memory_space<vmem>>, vector<1x8x128xf32>
    %65 = vector.shape_cast %64 : vector<1x8x128xf32> to vector<8x128xf32>
    %c2_25 = arith.constant 2 : index
    %c0_26 = arith.constant 0 : index
    %c0_27 = arith.constant 0 : index
    %66 = vector.load %arg2[%c2_25, %c0_26, %c0_27] : memref<3x8x128xf32, #tpu.memory_space<vmem>>, vector<1x8x128xf32>
    %67 = vector.shape_cast %66 : vector<1x8x128xf32> to vector<8x128xf32>
    %68 = arith.mulf %63, %63 : vector<8x128xf32>
    %69 = arith.mulf %65, %65 : vector<8x128xf32>
    %70 = arith.mulf %67, %67 : vector<8x128xf32>
    %71 = arith.mulf %33, %33 : vector<8x128xf32>
    %72 = arith.mulf %71, %68 : vector<8x128xf32>
    %73 = arith.mulf %36, %36 : vector<8x128xf32>
    %74 = arith.mulf %73, %69 : vector<8x128xf32>
    %75 = arith.addf %72, %74 : vector<8x128xf32>
    %76 = arith.mulf %39, %39 : vector<8x128xf32>
    %77 = arith.mulf %76, %70 : vector<8x128xf32>
    %78 = arith.addf %75, %77 : vector<8x128xf32>
    %c0_28 = arith.constant 0 : index
    %c0_29 = arith.constant 0 : index
    %c0_30 = arith.constant 0 : index
    %79 = vector.load %arg3[%c0_28, %c0_29, %c0_30] : memref<6x8x128xf32, #tpu.memory_space<vmem>>, vector<1x8x128xf32>
    %80 = vector.shape_cast %79 : vector<1x8x128xf32> to vector<8x128xf32>
    %81 = vector.shape_cast %78 : vector<8x128xf32> to vector<1x8x128xf32>
    tpu.vector_store %arg3[%c0_28, %c0_29, %c0_30], %81 {strides = array<i32>} : memref<6x8x128xf32, #tpu.memory_space<vmem>>, vector<1x8x128xf32>,
    %82 = arith.mulf %33, %42 : vector<8x128xf32>
    %83 = arith.mulf %82, %68 : vector<8x128xf32>
    %84 = arith.mulf %36, %47 : vector<8x128xf32>
    %85 = arith.mulf %84, %69 : vector<8x128xf32>
    %86 = arith.addf %83, %85 : vector<8x128xf32>
    %87 = arith.mulf %39, %50 : vector<8x128xf32>
    %88 = arith.mulf %87, %70 : vector<8x128xf32>
    %89 = arith.addf %86, %88 : vector<8x128xf32>
    %c1_31 = arith.constant 1 : index
    %c0_32 = arith.constant 0 : index
    %c0_33 = arith.constant 0 : index
    %90 = vector.load %arg3[%c1_31, %c0_32, %c0_33] : memref<6x8x128xf32, #tpu.memory_space<vmem>>, vector<1x8x128xf32>
    %91 = vector.shape_cast %90 : vector<1x8x128xf32> to vector<8x128xf32>
    %92 = vector.shape_cast %89 : vector<8x128xf32> to vector<1x8x128xf32>
    tpu.vector_store %arg3[%c1_31, %c0_32, %c0_33], %92 {strides = array<i32>} : memref<6x8x128xf32, #tpu.memory_space<vmem>>, vector<1x8x128xf32>,
    %93 = arith.mulf %33, %53 : vector<8x128xf32>
    %94 = arith.mulf %93, %68 : vector<8x128xf32>
    %95 = arith.mulf %36, %56 : vector<8x128xf32>
    %96 = arith.mulf %95, %69 : vector<8x128xf32>
    %97 = arith.addf %94, %96 : vector<8x128xf32>
    %98 = arith.mulf %39, %61 : vector<8x128xf32>
    %99 = arith.mulf %98, %70 : vector<8x128xf32>
    %100 = arith.addf %97, %99 : vector<8x128xf32>
    %c2_34 = arith.constant 2 : index
    %c0_35 = arith.constant 0 : index
    %c0_36 = arith.constant 0 : index
    %101 = vector.load %arg3[%c2_34, %c0_35, %c0_36] : memref<6x8x128xf32, #tpu.memory_space<vmem>>, vector<1x8x128xf32>
    %102 = vector.shape_cast %101 : vector<1x8x128xf32> to vector<8x128xf32>
    %103 = vector.shape_cast %100 : vector<8x128xf32> to vector<1x8x128xf32>
    tpu.vector_store %arg3[%c2_34, %c0_35, %c0_36], %103 {strides = array<i32>} : memref<6x8x128xf32, #tpu.memory_space<vmem>>, vector<1x8x128xf32>,
    %104 = arith.mulf %42, %42 : vector<8x128xf32>
    %105 = arith.mulf %104, %68 : vector<8x128xf32>
    %106 = arith.mulf %47, %47 : vector<8x128xf32>
    %107 = arith.mulf %106, %69 : vector<8x128xf32>
    %108 = arith.addf %105, %107 : vector<8x128xf32>
    %109 = arith.mulf %50, %50 : vector<8x128xf32>
    %110 = arith.mulf %109, %70 : vector<8x128xf32>
    %111 = arith.addf %108, %110 : vector<8x128xf32>
    %c3_37 = arith.constant 3 : index
    %c0_38 = arith.constant 0 : index
    %c0_39 = arith.constant 0 : index
    %112 = vector.load %arg3[%c3_37, %c0_38, %c0_39] : memref<6x8x128xf32, #tpu.memory_space<vmem>>, vector<1x8x128xf32>
    %113 = vector.shape_cast %112 : vector<1x8x128xf32> to vector<8x128xf32>
    %114 = vector.shape_cast %111 : vector<8x128xf32> to vector<1x8x128xf32>
    tpu.vector_store %arg3[%c3_37, %c0_38, %c0_39], %114 {strides = array<i32>} : memref<6x8x128xf32, #tpu.memory_space<vmem>>, vector<1x8x128xf32>,
    %115 = arith.mulf %42, %53 : vector<8x128xf32>
    %116 = arith.mulf %115, %68 : vector<8x128xf32>
    %117 = arith.mulf %47, %56 : vector<8x128xf32>
    %118 = arith.mulf %117, %69 : vector<8x128xf32>
    %119 = arith.addf %116, %118 : vector<8x128xf32>
    %120 = arith.mulf %50, %61 : vector<8x128xf32>
    %121 = arith.mulf %120, %70 : vector<8x128xf32>
    %122 = arith.addf %119, %121 : vector<8x128xf32>
    %c4 = arith.constant 4 : index
    %c0_40 = arith.constant 0 : index
    %c0_41 = arith.constant 0 : index
    %123 = vector.load %arg3[%c4, %c0_40, %c0_41] : memref<6x8x128xf32, #tpu.memory_space<vmem>>, vector<1x8x128xf32>
    %124 = vector.shape_cast %123 : vector<1x8x128xf32> to vector<8x128xf32>
    %125 = vector.shape_cast %122 : vector<8x128xf32> to vector<1x8x128xf32>
    tpu.vector_store %arg3[%c4, %c0_40, %c0_41], %125 {strides = array<i32>} : memref<6x8x128xf32, #tpu.memory_space<vmem>>, vector<1x8x128xf32>,
    %126 = arith.mulf %53, %53 : vector<8x128xf32>
    %127 = arith.mulf %126, %68 : vector<8x128xf32>
    %128 = arith.mulf %56, %56 : vector<8x128xf32>
    %129 = arith.mulf %128, %69 : vector<8x128xf32>
    %130 = arith.addf %127, %129 : vector<8x128xf32>
    %131 = arith.mulf %61, %61 : vector<8x128xf32>
    %132 = arith.mulf %131, %70 : vector<8x128xf32>
    %133 = arith.addf %130, %132 : vector<8x128xf32>
    %c5 = arith.constant 5 : index
    %c0_42 = arith.constant 0 : index
    %c0_43 = arith.constant 0 : index
    %134 = vector.load %arg3[%c5, %c0_42, %c0_43] : memref<6x8x128xf32, #tpu.memory_space<vmem>>, vector<1x8x128xf32>
    %135 = vector.shape_cast %134 : vector<1x8x128xf32> to vector<8x128xf32>
    %136 = vector.shape_cast %133 : vector<8x128xf32> to vector<1x8x128xf32>
    tpu.vector_store %arg3[%c5, %c0_42, %c0_43], %136 {strides = array<i32>} : memref<6x8x128xf32, #tpu.memory_space<vmem>>, vector<1x8x128xf32>,
    return
  }
  func.func @transform_0(%arg0: i32) -> (i32, i32, i32) {
    %c0_i32 = arith.constant 0 : i32
    %c0_i32_0 = arith.constant 0 : i32
    %c0_i32_1 = arith.constant 0 : i32
    return %c0_i32, %arg0, %c0_i32_0 : i32, i32, i32
  }
  func.func @transform_1(%arg0: i32) -> (i32, i32, i32) {
    %c0_i32 = arith.constant 0 : i32
    %c0_i32_0 = arith.constant 0 : i32
    %c0_i32_1 = arith.constant 0 : i32
    return %c0_i32, %arg0, %c0_i32_0 : i32, i32, i32
  }
  func.func @transform_2(%arg0: i32) -> (i32, i32, i32) {
    %c0_i32 = arith.constant 0 : i32
    %c0_i32_0 = arith.constant 0 : i32
    %c0_i32_1 = arith.constant 0 : i32
    return %c0_i32, %arg0, %c0_i32_0 : i32, i32, i32
  }
}

</mosaic_0001>

<bundles_post_ra>
// kernel: tpu_custom_call.1
= control target key start
LH: loop header
LB: loop body
LE: loop exit
PB: predicated region body
PF: predicated region fallthrough
CT: control target
= control target key end

     0   :  { %7 = vsyncpa [#allocation3], 0  ;;  %s342_s0 = inlined_call_operand.hbm [shape: f32[4,8,128], index: 0, kind: input, shape index: {}]   ;;  %s343_s1 = inlined_call_operand.hbm [shape: f32[3,8,128], index: 1, kind: input, shape index: {}]   ;;  %s344_s2 = inlined_call_operand.hbm [shape: f32[6,8,128], index: 2, kind: output, shape index: {}]  }
   0x1   :  { %8 = vsyncpa [#allocation6], 0 }
   0x2   :  { %9 = vsyncpa [#allocation4], 0  ;;  %s253_s9 = smov [#allocation2]   ;;  %s181_s13 = scalar_lea.hbm %s342_s0, 512 }
   0x3   :  { %s15_s10 = sshll.u32 %s253_s9, 4  ;;  %p182_p0 = scmp.ne.s32.totalorder %s342_s0, %s181_s13  ;;  %s16_s10 = int_to_ptr.vmem [resolvable:$true] %s15_s10 }
   0x4   :  { %p185_p1 = scmp.lt.u32.totalorder %s181_s13, %s342_s0 }
   0x6   :  { %p187_p2 = pnand %p185_p1, %p182_p0 }
   0x8   :  { %190 = shalt.err (!%p187_p2)
}
   0x9   :  { %s191_s18 = scalar_lea.vmem %s16_s10, 512  ;;  %p196_p4 = scmp.lt.s32.totalorder %s16_s10, %s16_s10 }
   0xa   :  { %p192_p3 = scmp.ne.s32.totalorder %s16_s10, %s191_s18  ;;  %p197_p5 = scmp.lt.s32.totalorder %s191_s18, %s191_s18 }
   0xc   :  { %p198_p6 = por %p197_p5, %p196_p4 }
   0xe   :  { %p199_p7 = pnand %p198_p6, %p192_p3 }
  0x10   :  { %202 = shalt.err (!%p199_p7)
}
  0x11   :  { %s254_s19 = smov 128   ;;  %s255_s20 = smov 8  }
  0x12   :  { %21 = dma.hbm_to_vmem [thread:$0]  %s342_s0, 512, %s16_s10, [#allocation3], %s254_s19, %s254_s19, %s255_s20  }
  0x13   :  { %s256_s23 = smov [#allocation5]   ;;  %s203_s27 = scalar_lea.hbm %s343_s1, 384 }
  0x14   :  { %s27_s24 = sshll.u32 %s256_s23, 4  ;;  %p204_p8 = scmp.ne.s32.totalorder %s343_s1, %s203_s27  ;;  %s28_s24 = int_to_ptr.vmem [resolvable:$true] %s27_s24 }
  0x15   :  { %p207_p9 = scmp.lt.u32.totalorder %s203_s27, %s343_s1 }
  0x17   :  { %p209_p10 = pnand %p207_p9, %p204_p8 }
  0x19   :  { %212 = shalt.err (!%p209_p10)
}
  0x1a   :  { %s213_s4 = scalar_lea.vmem %s28_s24, 384  ;;  %p218_p12 = scmp.lt.s32.totalorder %s28_s24, %s28_s24 }
  0x1b   :  { %p214_p11 = scmp.ne.s32.totalorder %s28_s24, %s213_s4  ;;  %p219_p13 = scmp.lt.s32.totalorder %s213_s4, %s213_s4 }
  0x1d   :  { %p220_p0 = por %p219_p13, %p218_p12 }
  0x1f   :  { %p221_p1 = pnand %p220_p0, %p214_p11 }
  0x21   :  { %224 = shalt.err (!%p221_p1)
}
  0x22   :  { %33 = dma.hbm_to_vmem [thread:$0]  %s343_s1, 384, %s28_s24, [#allocation6], %s254_s19, %s254_s19, %s255_s20  }
  0x23   :  { %247 = dma.done.wait [#allocation3], 512  }
  0x24   :  { %248 = vsyncadd [#allocation3], 4294966784 }
  0x25   :  { %249 = dma.done.wait [#allocation6], 384  }
  0x26   :  { %250 = vsyncadd [#allocation6], 4294966912  ;;  %v40_v0 = vld [vmem:[#allocation2] sm:$0xff]  ;;  %v42_v1 = vld [vmem:[#allocation2 + $0x8] sm:$0xff]  ;;  %s257_s1 = smov [#allocation7]  }
  0x27   :  { %v44_v2 = vld [vmem:[#allocation2 + $0x10] sm:$0xff]  ;;  %v46_v3 = vld [vmem:[#allocation2 + $0x18] sm:$0xff]  ;;  %v47_v4 = vmul.f32 %v40_v0, %v40_v0  ;;  %v48_v5 = vmul.f32 %v42_v1, %v42_v1  ;;  %v89_v11 = vld [vmem:[#allocation5] sm:$0xff]  ;;  %s161_s6 = sshll.u32 %s257_s1, 4  ;;  %s162_s6 = int_to_ptr.vmem [resolvable:$true] %s161_s6 }
  0x28   :  { %v50_v6 = vmul.f32 %v44_v2, %v44_v2  ;;  %v52_v8 = vmul.f32 %v46_v3, %v46_v3  ;;  %v91_v17 = vld [vmem:[#allocation5 + $0x8] sm:$0xff]  ;;  %v93_v18 = vld [vmem:[#allocation5 + $0x10] sm:$0xff]  ;;  %v303_v19 = vmul.f32 %v89_v11, %v89_v11  ;;  %s225_s7 = scalar_lea.vmem %s162_s6, 768  ;;  %p230_p3 = scmp.lt.s32.totalorder %s162_s6, %s162_s6 }
  0x29   :  { %v49_v7 = vadd.f32 %v48_v5, %v47_v4  ;;  %v305_v29 = vmul.f32 %v91_v17, %v91_v17  ;;  %v307_v30 = vmul.f32 %v93_v18, %v93_v18  ;;  %p226_p2 = scmp.ne.s32.totalorder %s162_s6, %s225_s7  ;;  %p231_p4 = scmp.lt.s32.totalorder %s225_s7, %s225_s7 }
  0x2b   :  { %v51_v9 = vadd.f32 %v50_v6, %v49_v7  ;;  %p232_p5 = por %p231_p4, %p230_p3 }
  0x2d   :  { %v53_v10 = vadd.f32 %v52_v8, %v51_v9  ;;  %p233_p6 = pnand %p232_p5, %p226_p2 }
  0x2f   :  { %179 = vrsqrt.f32 %v53_v10 }
  0x39   :  { %v180_v12 = vpop.eup %179 }
  0x3a   :  { %v55_v13 = vmul.f32 %v180_v12, %v40_v0  ;;  %v56_v14 = vmul.f32 %v180_v12, %v42_v1  ;;  %v57_v15 = vmul.f32 %v180_v12, %v44_v2  ;;  %v58_v16 = vmul.f32 %v180_v12, %v46_v3 }
  0x3c   :  { %v60_v20 = vmul.f32 %v57_v15, %v57_v15  ;;  %v61_v21 = vmul.f32 %v58_v16, %v58_v16  ;;  %v62_v22 = vmul.f32 %v57_v15, %v56_v14  ;;  %v63_v23 = vmul.f32 %v58_v16, %v56_v14 }
  0x3d   :  { %v66_v24 = vmul.f32 %v57_v15, %v55_v13  ;;  %v67_v25 = vmul.f32 %v58_v16, %v55_v13  ;;  %v59_v26 = vmul.f32 %v56_v14, %v56_v14  ;;  %v64_v27 = vmul.f32 %v58_v16, %v57_v15 }
  0x3e   :  { %v68_v28 = vadd.f32 %v61_v21, %v60_v20  ;;  %v65_v31 = vmul.f32 %v56_v14, %v55_v13 }
  0x3f   :  { %v71_v32 = vsub.f32 %v62_v22, %v67_v25  ;;  %v73_v33 = vadd.f32 %v66_v24, %v63_v23  ;;  %v75_v34 = vadd.f32 %v67_v25, %v62_v22  ;;  %v77_v35 = vadd.f32 %v61_v21, %v59_v26 }
  0x40   :  { %v69_v36 = vmul.f32 2.0, %v68_v28  ;;  %v80_v37 = vsub.f32 %v64_v27, %v65_v31  ;;  %v82_v38 = vsub.f32 %v63_v23, %v66_v24  ;;  %v84_v39 = vadd.f32 %v65_v31, %v64_v27 }
  0x41   :  { %v72_v40 = vmul.f32 2.0, %v71_v32  ;;  %v74_v41 = vmul.f32 2.0, %v73_v33  ;;  %v76_v42 = vmul.f32 2.0, %v75_v34  ;;  %v78_v43 = vmul.f32 2.0, %v77_v35 }
  0x42   :  { %v70_v44 = vsub.f32 1.0, %v69_v36  ;;  %v81_v45 = vmul.f32 2.0, %v80_v37  ;;  %v83_v46 = vmul.f32 2.0, %v82_v38  ;;  %v85_v47 = vmul.f32 2.0, %v84_v39 }
  0x43   :  { %v99_v48 = vmul.f32 %v72_v40, %v72_v40  ;;  %v102_v49 = vmul.f32 %v74_v41, %v74_v41  ;;  %v79_v50 = vsub.f32 1.0, %v78_v43  ;;  %v86_v51 = vadd.f32 %v60_v20, %v59_v26 }
  0x44   :  { %v97_v52 = vmul.f32 %v70_v44, %v70_v44  ;;  %v106_v53 = vmul.f32 %v76_v42, %v70_v44  ;;  %v111_v54 = vmul.f32 %v81_v45, %v74_v41  ;;  %v116_v55 = vmul.f32 %v83_v46, %v70_v44 }
  0x45   :  { %v100_v56 = vmul.f32 %v99_v48, %v305_v29  ;;  %v103_v57 = vmul.f32 %v102_v49, %v307_v30  ;;  %v108_v58 = vmul.f32 %v79_v50, %v72_v40  ;;  %v87_v59 = vmul.f32 2.0, %v86_v51 }
  0x46   :  { %v98_v60 = vmul.f32 %v97_v52, %v303_v19  ;;  %v107_v61 = vmul.f32 %v106_v53, %v303_v19  ;;  %v112_v62 = vmul.f32 %v111_v54, %v307_v30  ;;  %v117_v63 = vmul.f32 %v116_v55, %v303_v19 }
  0x47   :  { %v109_v0 = vmul.f32 %v108_v58, %v305_v29  ;;  %v88_v1 = vsub.f32 1.0, %v87_v59  ;;  %v118_v2 = vmul.f32 %v85_v47, %v72_v40  ;;  %v126_v3 = vmul.f32 %v76_v42, %v76_v42 }
  0x48   :  { %v101_v4 = vadd.f32 %v100_v56, %v98_v60  ;;  %v128_v5 = vmul.f32 %v79_v50, %v79_v50  ;;  %v131_v6 = vmul.f32 %v81_v45, %v81_v45  ;;  %v136_v7 = vmul.f32 %v83_v46, %v76_v42 }
  0x49   :  { %v110_v8 = vadd.f32 %v109_v0, %v107_v61  ;;  %v119_v9 = vmul.f32 %v118_v2, %v305_v29  ;;  %v121_v10 = vmul.f32 %v88_v1, %v74_v41  ;;  %v127_v11 = vmul.f32 %v126_v3, %v303_v19 }
  0x4a   :  { %v104_v12 = vadd.f32 %v103_v57, %v101_v4  ;;  %v129_v13 = vmul.f32 %v128_v5, %v305_v29  ;;  %v132_v14 = vmul.f32 %v131_v6, %v307_v30  ;;  %v137_v15 = vmul.f32 %v136_v7, %v303_v19 }
  0x4b   :  { %v113_v16 = vadd.f32 %v112_v62, %v110_v8  ;;  %v120_v17 = vadd.f32 %v119_v9, %v117_v63  ;;  %v122_v18 = vmul.f32 %v121_v10, %v307_v30  ;;  %v138_v20 = vmul.f32 %v85_v47, %v79_v50 }
  0x4c   :  { %105 = vst [vmem:[#allocation7] sm:$0xff] %v104_v12  ;;  %v130_v21 = vadd.f32 %v129_v13, %v127_v11  ;;  %v141_v22 = vmul.f32 %v88_v1, %v81_v45  ;;  %v146_v23 = vmul.f32 %v83_v46, %v83_v46  ;;  %v148_v24 = vmul.f32 %v85_v47, %v85_v47 }
  0x4d   :  { %115 = vst [vmem:[#allocation7 + $0x8] sm:$0xff] %v113_v16  ;;  %v123_v25 = vadd.f32 %v122_v18, %v120_v17  ;;  %v139_v26 = vmul.f32 %v138_v20, %v305_v29  ;;  %v151_v27 = vmul.f32 %v88_v1, %v88_v1 }
  0x4e   :  { %v133_v28 = vadd.f32 %v132_v14, %v130_v21  ;;  %v142_v31 = vmul.f32 %v141_v22, %v307_v30  ;;  %v147_v32 = vmul.f32 %v146_v23, %v303_v19  ;;  %v149_v33 = vmul.f32 %v148_v24, %v305_v29 }
  0x4f   :  { %125 = vst [vmem:[#allocation7 + $0x10] sm:$0xff] %v123_v25  ;;  %v140_v34 = vadd.f32 %v139_v26, %v137_v15  ;;  %v152_v35 = vmul.f32 %v151_v27, %v307_v30 }
  0x50   :  { %135 = vst [vmem:[#allocation7 + $0x18] sm:$0xff] %v133_v28  ;;  %v150_v36 = vadd.f32 %v149_v33, %v147_v32 }
  0x51   :  { %v143_v37 = vadd.f32 %v142_v31, %v140_v34 }
  0x52   :  { %v153_v38 = vadd.f32 %v152_v35, %v150_v36 }
  0x53   :  { %145 = vst [vmem:[#allocation7 + $0x20] sm:$0xff] %v143_v37 }
  0x54   :  { %155 = vst [vmem:[#allocation7 + $0x28] sm:$0xff] %v153_v38 }
  0x55   :  { %236 = shalt.err (!%p233_p6)
}
  0x56   :  { %s237_s10 = scalar_lea.hbm %s344_s2, 768 }
  0x57   :  { %p238_p7 = scmp.ne.s32.totalorder %s344_s2, %s237_s10  ;;  %p241_p8 = scmp.lt.u32.totalorder %s237_s10, %s344_s2 }
  0x59   :  { %p243_p9 = pnand %p241_p8, %p238_p7 }
  0x5b   :  { %246 = shalt.err (!%p243_p9)
}
  0x5c   :  { %167 = dma.vmem_to_hbm [thread:$0]  %s162_s6, 768, %s344_s2, [#allocation4], %s254_s19, %s254_s19, %s255_s20  }
  0x5d   :  { %251 = dma.done.wait [#allocation4], 768  }
  0x5e   :  { %252 = vsyncadd [#allocation4], 4294966528 }
  0x5f   :  { %171 = vsyncpa [#allocation3], 1 }
  0x60   :  { %172 = vsyncpa [#allocation6], 1 }
  0x61   :  { %173 = vsyncpa [#allocation4], 1 }

</bundles_post_ra>
